<compile_context>
chip_gen: v7x
topology: tpu7x:2x2x1
jax: 0.10.0
libtpu: 0.0.40
codegen_flags: <defaults>
</compile_context>

<pallas_src>
import math

import jax
import jax.numpy as jnp
from jax.experimental import pallas as pl
from jax.experimental.pallas import tpu as pltpu

LANE = 128
H1 = 256       # fc1 width (already lane-aligned)
H2 = 64        # fc2 width (padded to 128 for the kernel)
H2_PAD = 128


def _round_up(n, m):
    return ((n + m - 1) // m) * m


# ----------------------------------------------------------------------------
# Pallas kernel: fused 3-layer MLP forward for one batch tile
# ----------------------------------------------------------------------------
def _dqn_kernel(x_ref, w1_ref, b1_ref, w2_ref, b2_ref, w3_ref, b3_ref, o_ref):
    # Layer 1: Linear(in_pad, 256) + Tanh   (bf16 x bf16 -> f32 accumulate)
    h1 = jnp.tanh(
        jnp.dot(x_ref[...], w1_ref[...], preferred_element_type=jnp.float32)
        + b1_ref[...]
    )
    # Layer 2: Linear(256, 128-padded-64) + Tanh
    h2 = jnp.tanh(
        jnp.dot(h1.astype(jnp.bfloat16), w2_ref[...],
                preferred_element_type=jnp.float32)
        + b2_ref[...]
    )
    # Output layer: Linear(128-padded-64, out_pad), no activation
    o_ref[...] = (
        jnp.dot(h2.astype(jnp.bfloat16), w3_ref[...],
                preferred_element_type=jnp.float32)
        + b3_ref[...]
    ).astype(o_ref.dtype)


# ----------------------------------------------------------------------------
# Parameter packing: pad narrow dims to 128 lanes, cast weights to bf16.
# Done ONCE, outside the hot path.  Padded bias lanes are zero so the padded
# hidden columns are tanh(0)=0 and padded w3 rows/cols contribute nothing.
# ----------------------------------------------------------------------------
def pack_params(params):
    w1, b1 = params["w1"], params["b1"]
    w2, b2 = params["w2"], params["b2"]
    w3, b3 = params["w3"], params["b3"]
    input_len, out_len = w1.shape[0], w3.shape[1]
    in_pad = _round_up(input_len, LANE)
    out_pad = _round_up(out_len, LANE)

    def pad2(a, shape):
        return jnp.zeros(shape, a.dtype).at[: a.shape[0], : a.shape[1]].set(a)

    return {
        "w1": pad2(w1, (in_pad, H1)).astype(jnp.bfloat16),
        "b1": b1.astype(jnp.float32),                          # (1, 256)
        "w2": pad2(w2, (H1, H2_PAD)).astype(jnp.bfloat16),
        "b2": pad2(b2, (1, H2_PAD)).astype(jnp.float32),
        "w3": pad2(w3, (H2_PAD, out_pad)).astype(jnp.bfloat16),
        "b3": pad2(b3, (1, out_pad)).astype(jnp.float32),
        "input_len": input_len,
        "out_len": out_len,
    }


# ----------------------------------------------------------------------------
# Wrapper: batch-tiled pallas_call with VMEM-resident weights
# ----------------------------------------------------------------------------
def dqn_forward(x, packed, *, tm=512):
    input_len = packed["input_len"]
    out_len = packed["out_len"]
    w1, b1 = packed["w1"], packed["b1"]
    w2, b2 = packed["w2"], packed["b2"]
    w3, b3 = packed["w3"], packed["b3"]
    in_pad, out_pad = w1.shape[0], w3.shape[1]

    batch = x.shape[0]
    tm = min(tm, _round_up(batch, 8))          # tiny batches: single 8-row tile
    b_pad = _round_up(batch, tm)
    grid = (b_pad // tm,)

    # Zero-pad batch rows / feature lanes; cast activations to bf16 for the MXU.
    xp = jnp.zeros((b_pad, in_pad), jnp.bfloat16)
    xp = xp.at[:batch, :input_len].set(x.astype(jnp.bfloat16))

    # Weights/biases: same block every grid step -> stay resident in VMEM.
    resident = lambda a: pl.BlockSpec(a.shape, lambda i: (0,) * a.ndim)

    out = pl.pallas_call(
        _dqn_kernel,
        out_shape=jax.ShapeDtypeStruct((b_pad, out_pad), jnp.float32),
        grid=grid,
        in_specs=[
            pl.BlockSpec((tm, in_pad), lambda i: (i, 0)),      # x tile streams
            resident(w1), resident(b1),
            resident(w2), resident(b2),
            resident(w3), resident(b3),
        ],
        out_specs=pl.BlockSpec((tm, out_pad), lambda i: (i, 0)),
        compiler_params=pltpu.CompilerParams(
            dimension_semantics=("parallel",)),
    )(xp, w1, b1, w2, b2, w3, b3)

    return out[:batch, :out_len]


# ----------------------------------------------------------------------------
# Deterministic parameter init matching the PyTorch module's __init__:
#   - Linear weights: xavier_uniform_ with gain = calculate_gain('tanh') = 5/3
#   - Linear biases:  filled with 0.01
# ----------------------------------------------------------------------------
def _xavier_uniform(key, fan_in, fan_out, gain):
    bound = gain * math.sqrt(6.0 / (fan_in + fan_out))
    # Stored as (fan_in, fan_out) so the kernel does x @ W (== x @ W_pt.T).
    return jax.random.uniform(
        key, (fan_in, fan_out), dtype=jnp.float32, minval=-bound, maxval=bound
    )


def init_dqn_params(key, input_len, output_len):
    gain = 5.0 / 3.0  # nn.init.calculate_gain('tanh')
    k1, k2, k3 = jax.random.split(key, 3)
    return {
        "w1": _xavier_uniform(k1, input_len, H1, gain),
        "b1": jnp.full((1, H1), 0.01, dtype=jnp.float32),
        "w2": _xavier_uniform(k2, H1, H2, gain),
        "b2": jnp.full((1, H2), 0.01, dtype=jnp.float32),
        "w3": _xavier_uniform(k3, H2, output_len, gain),
        "b3": jnp.full((1, output_len), 0.01, dtype=jnp.float32),
    }


# Pure-JAX f32 reference for correctness checking.
def dqn_forward_ref(x, p):
    h1 = jnp.tanh(x @ p["w1"] + p["b1"])
    h2 = jnp.tanh(h1 @ p["w2"] + p["b2"])
    return h2 @ p["w3"] + p["b3"]


if __name__ == "__main__":
    key = jax.random.PRNGKey(0)
    k_param, k_x1, k_x2 = jax.random.split(key, 3)

    input_len = 32   # small synthetic observation size
    output_len = 8   # small synthetic action space

    params = init_dqn_params(k_param, input_len, output_len)
    packed = pack_params(params)

    def check(x):
        out = jax.block_until_ready(dqn_forward(x, packed))
        ref = dqn_forward_ref(x, params)
        assert out.shape == ref.shape
        rel_err = jnp.max(jnp.abs(out - ref)) / (jnp.max(jnp.abs(ref)) + 1e-6)
        assert float(rel_err) < 5e-2, f"mismatch vs reference: rel_err={rel_err}"

    # Small inference-style batch (single 8-row tile, grid=(1,)).
    check(jax.random.normal(k_x1, (8, input_len), dtype=jnp.float32))
    # Replay-style batch that is not a tile multiple (exercises grid + padding).
    check(jax.random.normal(k_x2, (600, input_len), dtype=jnp.float32))

    print("KERNEL_OK")
</pallas_src>

<mosaic_0001>
module attributes {stable_mosaic.version = 11 : i64} {
  func.func @_dqn_kernel(%arg0: i32, %arg1: memref<8x128xbf16, #tpu.memory_space<vmem>>, %arg2: memref<128x256xbf16, #tpu.memory_space<vmem>>, %arg3: memref<1x256xf32, #tpu.memory_space<vmem>>, %arg4: memref<256x128xbf16, #tpu.memory_space<vmem>>, %arg5: memref<1x128xf32, #tpu.memory_space<vmem>>, %arg6: memref<128x128xbf16, #tpu.memory_space<vmem>>, %arg7: memref<1x128xf32, #tpu.memory_space<vmem>>, %arg8: memref<8x128xf32, #tpu.memory_space<vmem>>) attributes {dimension_semantics = [#tpu.dimension_semantics<parallel>], iteration_bounds = array<i64: 1>, scalar_prefetch = 0 : i64, scratch_operands = 0 : i64, tpu.core_type = #tpu.core_type<tc>, window_params = [{transform_indices = @transform_0, window_bounds = array<i64: 8, 128>}, {pipeline_mode = #tpu.pipeline_mode<synchronous>, transform_indices = @transform_1, window_bounds = array<i64: 128, 256>}, {pipeline_mode = #tpu.pipeline_mode<synchronous>, transform_indices = @transform_2, window_bounds = array<i64: 1, 256>}, {pipeline_mode = #tpu.pipeline_mode<synchronous>, transform_indices = @transform_3, window_bounds = array<i64: 256, 128>}, {pipeline_mode = #tpu.pipeline_mode<synchronous>, transform_indices = @transform_4, window_bounds = array<i64: 1, 128>}, {pipeline_mode = #tpu.pipeline_mode<synchronous>, transform_indices = @transform_5, window_bounds = array<i64: 128, 128>}, {pipeline_mode = #tpu.pipeline_mode<synchronous>, transform_indices = @transform_6, window_bounds = array<i64: 1, 128>}, {transform_indices = @transform_7, window_bounds = array<i64: 8, 128>}]} {
    %c0 = arith.constant 0 : index
    %c0_0 = arith.constant 0 : index
    %0 = vector.load %arg1[%c0, %c0_0] : memref<8x128xbf16, #tpu.memory_space<vmem>>, vector<8x128xbf16>
    %c0_1 = arith.constant 0 : index
    %c0_2 = arith.constant 0 : index
    %1 = vector.load %arg2[%c0_1, %c0_2] : memref<128x256xbf16, #tpu.memory_space<vmem>>, vector<128x256xbf16>
    %cst = arith.constant dense<0.000000e+00> : vector<8x256xf32>
    %2 = tpu.matmul %0, %1, %cst {dimension_numbers = #tpu.dot_dimension_numbers<[1], [0], [0], [1], [0, 0, 1, 1], [], []>} : vector<8x128xbf16>, vector<128x256xbf16>, vector<8x256xf32> -> vector<8x256xf32>
    %c0_3 = arith.constant 0 : index
    %c0_4 = arith.constant 0 : index
    %3 = vector.load %arg3[%c0_3, %c0_4] : memref<1x256xf32, #tpu.memory_space<vmem>>, vector<1x256xf32>
    %4 = vector.broadcast %3 : vector<1x256xf32> to vector<8x256xf32>
    %5 = arith.addf %2, %4 : vector<8x256xf32>
    %6 = math.tanh %5 : vector<8x256xf32>
    %7 = arith.truncf %6 : vector<8x256xf32> to vector<8x256xbf16>
    %c0_5 = arith.constant 0 : index
    %c0_6 = arith.constant 0 : index
    %8 = vector.load %arg4[%c0_5, %c0_6] : memref<256x128xbf16, #tpu.memory_space<vmem>>, vector<256x128xbf16>
    %cst_7 = arith.constant dense<0.000000e+00> : vector<8x128xf32>
    %9 = tpu.matmul %7, %8, %cst_7 {dimension_numbers = #tpu.dot_dimension_numbers<[1], [0], [0], [1], [0, 0, 1, 1], [], []>} : vector<8x256xbf16>, vector<256x128xbf16>, vector<8x128xf32> -> vector<8x128xf32>
    %c0_8 = arith.constant 0 : index
    %c0_9 = arith.constant 0 : index
    %10 = vector.load %arg5[%c0_8, %c0_9] : memref<1x128xf32, #tpu.memory_space<vmem>>, vector<1x128xf32>
    %11 = vector.broadcast %10 : vector<1x128xf32> to vector<8x128xf32>
    %12 = arith.addf %9, %11 : vector<8x128xf32>
    %13 = math.tanh %12 : vector<8x128xf32>
    %14 = arith.truncf %13 : vector<8x128xf32> to vector<8x128xbf16>
    %c0_10 = arith.constant 0 : index
    %c0_11 = arith.constant 0 : index
    %15 = vector.load %arg6[%c0_10, %c0_11] : memref<128x128xbf16, #tpu.memory_space<vmem>>, vector<128x128xbf16>
    %cst_12 = arith.constant dense<0.000000e+00> : vector<8x128xf32>
    %16 = tpu.matmul %14, %15, %cst_12 {dimension_numbers = #tpu.dot_dimension_numbers<[1], [0], [0], [1], [0, 0, 1, 1], [], []>} : vector<8x128xbf16>, vector<128x128xbf16>, vector<8x128xf32> -> vector<8x128xf32>
    %c0_13 = arith.constant 0 : index
    %c0_14 = arith.constant 0 : index
    %17 = vector.load %arg7[%c0_13, %c0_14] : memref<1x128xf32, #tpu.memory_space<vmem>>, vector<1x128xf32>
    %18 = vector.broadcast %17 : vector<1x128xf32> to vector<8x128xf32>
    %19 = arith.addf %16, %18 : vector<8x128xf32>
    %c0_15 = arith.constant 0 : index
    %c0_16 = arith.constant 0 : index
    %20 = vector.load %arg8[%c0_15, %c0_16] : memref<8x128xf32, #tpu.memory_space<vmem>>, vector<8x128xf32>
    tpu.vector_store %arg8[%c0_15, %c0_16], %19 {strides = array<i32>} : memref<8x128xf32, #tpu.memory_space<vmem>>, vector<8x128xf32>,
    return
  }
  func.func @transform_0(%arg0: i32) -> (i32, i32) {
    %c0_i32 = arith.constant 0 : i32
    %c0_i32_0 = arith.constant 0 : i32
    return %arg0, %c0_i32 : i32, i32
  }
  func.func @transform_1(%arg0: i32) -> (i32, i32) {
    %c0_i32 = arith.constant 0 : i32
    %c0_i32_0 = arith.constant 0 : i32
    %c0_i32_1 = arith.constant 0 : i32
    return %c0_i32, %c0_i32_0 : i32, i32
  }
  func.func @transform_2(%arg0: i32) -> (i32, i32) {
    %c0_i32 = arith.constant 0 : i32
    %c0_i32_0 = arith.constant 0 : i32
    %c0_i32_1 = arith.constant 0 : i32
    return %c0_i32, %c0_i32_0 : i32, i32
  }
  func.func @transform_3(%arg0: i32) -> (i32, i32) {
    %c0_i32 = arith.constant 0 : i32
    %c0_i32_0 = arith.constant 0 : i32
    %c0_i32_1 = arith.constant 0 : i32
    return %c0_i32, %c0_i32_0 : i32, i32
  }
  func.func @transform_4(%arg0: i32) -> (i32, i32) {
    %c0_i32 = arith.constant 0 : i32
    %c0_i32_0 = arith.constant 0 : i32
    %c0_i32_1 = arith.constant 0 : i32
    return %c0_i32, %c0_i32_0 : i32, i32
  }
  func.func @transform_5(%arg0: i32) -> (i32, i32) {
    %c0_i32 = arith.constant 0 : i32
    %c0_i32_0 = arith.constant 0 : i32
    %c0_i32_1 = arith.constant 0 : i32
    return %c0_i32, %c0_i32_0 : i32, i32
  }
  func.func @transform_6(%arg0: i32) -> (i32, i32) {
    %c0_i32 = arith.constant 0 : i32
    %c0_i32_0 = arith.constant 0 : i32
    %c0_i32_1 = arith.constant 0 : i32
    return %c0_i32, %c0_i32_0 : i32, i32
  }
  func.func @transform_7(%arg0: i32) -> (i32, i32) {
    %c0_i32 = arith.constant 0 : i32
    %c0_i32_0 = arith.constant 0 : i32
    return %arg0, %c0_i32 : i32, i32
  }
}

</mosaic_0001>

<bundles_post_ra>
// kernel: tpu_custom_call.1
= control target key start
LH: loop header
LB: loop body
LE: loop exit
PB: predicated region body
PF: predicated region fallthrough
CT: control target
= control target key end

     0   :  { %12 = vsyncpa [#allocation3], 0  ;;  %s939_s0 = inlined_call_operand.hbm [shape: bf16[8,128], index: 0, kind: input, shape index: {}]   ;;  %s940_s1 = inlined_call_operand.hbm [shape: bf16[128,256], index: 1, kind: input, shape index: {}]   ;;  %s941_s2 = inlined_call_operand.vmem [shape: f32[1,256], index: 2, kind: input, shape index: {}]   ;;  %s942_s3 = inlined_call_operand.hbm [shape: bf16[256,128], index: 3, kind: input, shape index: {}]   ;;  %s943_s4 = inlined_call_operand.vmem [shape: f32[1,128], index: 4, kind: input, shape index: {}]   ;;  %s944_s5 = inlined_call_operand.hbm [shape: bf16[128,128], index: 5, kind: input, shape index: {}]   ;;  %s945_s6 = inlined_call_operand.vmem [shape: f32[1,128], index: 6, kind: input, shape index: {}]   ;;  %s946_s7 = inlined_call_operand.hbm [shape: f32[8,128], index: 7, kind: output, shape index: {}]  }
   0x1   :  { %13 = vsyncpa [#allocation6], 0 }
   0x2   :  { %14 = vsyncpa [#allocation9], 0 }
   0x3   :  { %15 = vsyncpa [#allocation4], 0  ;;  %s818_s24 = smov [#allocation5]   ;;  %s700_s28 = scalar_lea.hbm %s940_s1, 2048 }
   0x4   :  { %s31_s25 = sshll.u32 %s818_s24, 4  ;;  %p701_p0 = scmp.ne.s32.totalorder %s940_s1, %s700_s28  ;;  %s32_s25 = int_to_ptr.vmem [resolvable:$true] %s31_s25 }
   0x5   :  { %p704_p1 = scmp.lt.u32.totalorder %s700_s28, %s940_s1 }
   0x7   :  { %p706_p2 = pnand %p704_p1, %p701_p0 }
   0x9   :  { %709 = shalt.err (!%p706_p2)
}
   0xa   :  { %s710_s10 = scalar_lea.vmem %s32_s25, 2048  ;;  %p715_p4 = scmp.lt.s32.totalorder %s32_s25, %s32_s25 }
   0xb   :  { %p711_p3 = scmp.ne.s32.totalorder %s32_s25, %s710_s10  ;;  %p716_p5 = scmp.lt.s32.totalorder %s710_s10, %s710_s10 }
   0xd   :  { %p717_p6 = por %p716_p5, %p715_p4 }
   0xf   :  { %p718_p7 = pnand %p717_p6, %p711_p3 }
  0x11   :  { %721 = shalt.err (!%p718_p7)
}
  0x12   :  { %s819_s11 = smov 128   ;;  %s820_s12 = smov 8  }
  0x13   :  { %37 = dma.hbm_to_vmem [thread:$0]  %s940_s1, 2048, %s32_s25, [#allocation6], %s819_s11, %s819_s11, %s820_s12  }
  0x14   :  { %s821_s15 = smov [#allocation2]   ;;  %s822_s17 = smov [#allocation7]  }
  0x15   :  { %s22_s16 = sshll.u32 %s821_s15, 4  ;;  %s45_s18 = sshll.u32 %s822_s17, 4  ;;  %s23_s16 = int_to_ptr.vmem [resolvable:$true] %s22_s16  ;;  %s46_s18 = int_to_ptr.vmem [resolvable:$true] %s45_s18 }
  0x16   :  { %s722_s21 = scalar_lea.hbm %s939_s0, 64 }
  0x17   :  { %p723_p8 = scmp.ne.s32.totalorder %s939_s0, %s722_s21  ;;  %p726_p9 = scmp.lt.u32.totalorder %s722_s21, %s939_s0 }
  0x19   :  { %p728_p10 = pnand %p726_p9, %p723_p8 }
  0x1b   :  { %731 = shalt.err (!%p728_p10)
}
  0x1c   :  { %s732_s1 = scalar_lea.vmem %s23_s16, 64  ;;  %p737_p12 = scmp.lt.s32.totalorder %s23_s16, %s23_s16 }
  0x1d   :  { %p733_p11 = scmp.ne.s32.totalorder %s23_s16, %s732_s1  ;;  %p738_p13 = scmp.lt.s32.totalorder %s732_s1, %s732_s1 }
  0x1f   :  { %p739_p0 = por %p738_p13, %p737_p12 }
  0x21   :  { %p740_p1 = pnand %p739_p0, %p733_p11 }
  0x23   :  { %743 = shalt.err (!%p740_p1)
}
  0x24   :  { %25 = dma.hbm_to_vmem [thread:$0]  %s939_s0, 64, %s23_s16, [#allocation3]  }
  0x25   :  { %s744_s30 = scalar_lea.hbm %s942_s3, 2048 }
  0x26   :  { %p745_p2 = scmp.ne.s32.totalorder %s942_s3, %s744_s30  ;;  %p748_p3 = scmp.lt.u32.totalorder %s744_s30, %s942_s3 }
  0x28   :  { %p750_p4 = pnand %p748_p3, %p745_p2 }
  0x2a   :  { %753 = shalt.err (!%p750_p4)
}
  0x2b   :  { %s754_s12 = scalar_lea.vmem %s46_s18, 2048  ;;  %p759_p6 = scmp.lt.s32.totalorder %s46_s18, %s46_s18 }
  0x2c   :  { %p755_p5 = scmp.ne.s32.totalorder %s46_s18, %s754_s12  ;;  %p760_p7 = scmp.lt.s32.totalorder %s754_s12, %s754_s12 }
  0x2e   :  { %p761_p8 = por %p760_p7, %p759_p6 }
  0x30   :  { %p762_p9 = pnand %p761_p8, %p755_p5 }
  0x32   :  { %765 = shalt.err (!%p762_p9)
}
  0x33   :  { %s823_s0 = smov 64   ;;  %s824_s13 = smov 4  }
  0x34   :  { %51 = dma.hbm_to_vmem [thread:$0]  %s942_s3, 2048, %s46_s18, [#allocation6], %s823_s0, %s823_s0, %s824_s13  }
  0x35   :  { %s825_s16 = smov [#allocation8]   ;;  %s766_s21 = scalar_lea.hbm %s944_s5, 1024 }
  0x36   :  { %s59_s17 = sshll.u32 %s825_s16, 4  ;;  %p767_p10 = scmp.ne.s32.totalorder %s944_s5, %s766_s21  ;;  %s60_s17 = int_to_ptr.vmem [resolvable:$true] %s59_s17 }
  0x37   :  { %p770_p11 = scmp.lt.u32.totalorder %s766_s21, %s944_s5 }
  0x39   :  { %p772_p12 = pnand %p770_p11, %p767_p10 }
  0x3b   :  { %775 = shalt.err (!%p772_p12)
}
  0x3c   :  { %s776_s1 = scalar_lea.vmem %s60_s17, 1024  ;;  %p781_p0 = scmp.lt.s32.totalorder %s60_s17, %s60_s17 }
  0x3d   :  { %p777_p13 = scmp.ne.s32.totalorder %s60_s17, %s776_s1  ;;  %p782_p1 = scmp.lt.s32.totalorder %s776_s1, %s776_s1 }
  0x3f   :  { %p783_p2 = por %p782_p1, %p781_p0 }
  0x41   :  { %p784_p3 = pnand %p783_p2, %p777_p13 }
  0x43   :  { %787 = shalt.err (!%p784_p3)
}
  0x44   :  { %65 = dma.hbm_to_vmem [thread:$0]  %s944_s5, 1024, %s60_s17, [#allocation9], %s823_s0, %s823_s0, %s824_s13  }
  0x45   :  { %810 = dma.done.wait [#allocation3], 64  }
  0x46   :  { %811 = vsyncadd [#allocation3], 4294967232 }
  0x47   :  { %812 = dma.done.wait [#allocation6], 4096  }
  0x48   :  { %813 = vsyncadd [#allocation6], 4294963200 }
  0x49   :  { %814 = dma.done.wait [#allocation9], 1024  }
  0x4a   :  { %815 = vsyncadd [#allocation9], 4294966272  ;;  %v826_v0 = vmov 0   ;;  %v646_v1 = vld [vmem:[#allocation5 + $0x4] ss:$8 sps:$4 sm:$0xff]   ;;  %v674_v15 = vld [vmem:[#allocation7 + $0x50] sm:$0xff]   ;;  %v100_v38 = vlaneseq }
  0x4b   :  { %222 = vmatprep.mubr.bf16.mxu0 %v826_v0  ;;  %v648_v2 = vld [vmem:[#allocation5] ss:$8 sps:$4 sm:$0xff]   ;;  %190 = vmatprep.subr.bf16.mxu0 %v646_v1  ;;  %v649_v3 = vld [vmem:[#allocation5 + $0x14] ss:$8 sps:$4 sm:$0xff]   ;;  %v651_v4 = vld [vmem:[#allocation5 + $0x10] ss:$8 sps:$4 sm:$0xff]  }
  0x4c   :  { %191 = vmatpush1.bf16.msra.mxu0 %v648_v2  ;;  %v652_v5 = vld [vmem:[#allocation5 + $0x24] ss:$8 sps:$4 sm:$0xff]   ;;  %v654_v6 = vld [vmem:[#allocation5 + $0x20] ss:$8 sps:$4 sm:$0xff]   ;;  %v655_v7 = vld [vmem:[#allocation5 + $0x34] ss:$8 sps:$4 sm:$0xff]  }
  0x4d   :  { %192 = vmatprep.subr.bf16.mxu0 %v649_v3  ;;  %v657_v8 = vld [vmem:[#allocation5 + $0x30] ss:$8 sps:$4 sm:$0xff]   ;;  %v658_v9 = vld [vmem:[#allocation5 + $0x44] ss:$8 sps:$4 sm:$0xff]   ;;  %v660_v12 = vld [vmem:[#allocation5 + $0x40] ss:$8 sps:$4 sm:$0xff]  }
  0x4e   :  { %v670_v10 = vld [vmem:[#allocation7 + $0x40] sm:$0xff]   ;;  %v672_v13 = vld [vmem:[#allocation7 + $0x48] sm:$0xff]   ;;  %v661_v16 = vld [vmem:[#allocation5 + $0x54] ss:$8 sps:$4 sm:$0xff]   ;;  %v827_v35 = vmov 0.0   ;;  %v101_v39 = vshrl.u32 %v100_v38, 7 }
  0x4f   :  { %v671_v11 = vld [vmem:[#allocation7] sm:$0xff]   ;;  %583 = vmatprep.subr.bf16.mxu1 %v670_v10  ;;  %v673_v14 = vld [vmem:[#allocation7 + $0x8] sm:$0xff]   ;;  %v663_v17 = vld [vmem:[#allocation5 + $0x50] ss:$8 sps:$4 sm:$0xff]   ;;  %vm828_vm0 = vmmov 0   ;;  %s829_s30 = smov [#allocation10]  }
  0x50   :  { %193 = vmatpush1.bf16.msra.mxu0 %v651_v4  ;;  %584 = vmatpush3.bf16.msra.mxu1 %v671_v11  ;;  %v664_v18 = vld [vmem:[#allocation5 + $0x64] ss:$8 sps:$4 sm:$0xff]   ;;  %v675_v19 = vld [vmem:[#allocation7 + $0x10] sm:$0xff]   ;;  %v676_v20 = vld [vmem:[#allocation7 + $0x58] sm:$0xff]   ;;  %v102_v40 = vsub.s32 0, %v101_v39  ;;  %v106_v42 = vsub.s32 1, %v101_v39 }
  0x51   :  { %194 = vmatprep.subr.bf16.mxu0 %v652_v5  ;;  %585 = vmatprep.subr.bf16.mxu1 %v672_v13  ;;  %v677_v21 = vld [vmem:[#allocation7 + $0x18] sm:$0xff]   ;;  %v666_v22 = vld [vmem:[#allocation5 + $0x60] ss:$8 sps:$4 sm:$0xff]   ;;  %v682_v30 = vld [vmem:[#allocation7 + $0x70] sm:$0xff]   ;;  %s530_s8 = sshll.u32 %s829_s30, 4  ;;  %s531_s8 = int_to_ptr.vmem [resolvable:$true] %s530_s8 }
  0x52   :  { %v667_v23 = vld [vmem:[#allocation5 + $0x74] ss:$8 sps:$4 sm:$0xff]   ;;  %v669_v24 = vld [vmem:[#allocation5 + $0x70] ss:$8 sps:$4 sm:$0xff]   ;;  %v678_v26 = vld [vmem:[#allocation7 + $0x60] sm:$0xff]   ;;  %p793_p5 = scmp.lt.s32.totalorder %s531_s8, %s531_s8 }
  0x53   :  { %v81_v25 = vld [vmem:[#allocation2] sm:$0xf]  ;;  %v679_v27 = vld [vmem:[#allocation7 + $0x20] sm:$0xff]   ;;  %v680_v28 = vld [vmem:[#allocation7 + $0x68] sm:$0xff]  }
  0x54   :  { %195 = vmatpush1.bf16.msra.mxu0 %v654_v6  ;;  %586 = vmatpush3.bf16.msra.mxu1 %v673_v14  ;;  %v681_v29 = vld [vmem:[#allocation7 + $0x28] sm:$0xff]   ;;  %v683_v31 = vld [vmem:[#allocation7 + $0x30] sm:$0xff]   ;;  %v684_v32 = vld [vmem:[#allocation7 + $0x78] sm:$0xff]  }
  0x55   :  { %196 = vmatprep.subr.bf16.mxu0 %v655_v7  ;;  %587 = vmatprep.subr.bf16.mxu1 %v674_v15  ;;  %v685_v33 = vld [vmem:[#allocation7 + $0x38] sm:$0xff]   ;;  %v686_v34 = vld [vmem:[#allocation8] sm:$0xff]   ;;  %v687_v36 = vld [vmem:[#allocation8 + $0x8] sm:$0xff]  }
  0x56   :  { %v688_v37 = vld [vmem:[#allocation8 + $0x10] sm:$0xff]   ;;  %v98_v41 = vld [vmem:[%s941_s2] sm:$0x3]  ;;  %v690_v56 = vld [vmem:[#allocation8 + $0x20] sm:$0xff]  }
  0x57   :  { %v103_v43 = vrot.slane %v98_v41, %v102_v40  ;;  %v107_v44 = vrot.slane %v98_v41, %v106_v42  ;;  %v689_v55 = vld [vmem:[#allocation8 + $0x18] sm:$0xff]   ;;  %v691_v57 = vld [vmem:[#allocation8 + $0x28] sm:$0xff]   ;;  %v692_v58 = vld [vmem:[#allocation8 + $0x30] sm:$0xff]  }
  0x58   :  { %197 = vmatpush1.bf16.msra.mxu0 %v657_v8  ;;  %588 = vmatpush3.bf16.msra.mxu1 %v675_v19  ;;  %v693_v59 = vld [vmem:[#allocation8 + $0x38] sm:$0xff]  }
  0x59   :  { %198 = vmatprep.subr.bf16.mxu0 %v658_v9  ;;  %589 = vmatprep.subr.bf16.mxu1 %v676_v20  ;;  %v557_v61 = vld [vmem:[%s943_s4] ss:$0 sm:$0xff]  ;;  %s788_s4 = scalar_lea.vmem %s531_s8, 128 }
  0x5a   :  { %v574_v5 = vld [vmem:[%s945_s6] ss:$0 sm:$0xff]  ;;  %p789_p4 = scmp.ne.s32.totalorder %s531_s8, %s788_s4  ;;  %p794_p6 = scmp.lt.s32.totalorder %s788_s4, %s788_s4 }
  0x5c   :  { %199 = vmatpush1.bf16.msra.mxu0 %v660_v12  ;;  %590 = vmatpush3.bf16.msra.mxu1 %v677_v21  ;;  %p795_p7 = por %p794_p6, %p793_p5 }
  0x5d   :  { %200 = vmatprep.subr.bf16.mxu0 %v661_v16  ;;  %591 = vmatprep.subr.bf16.mxu1 %v678_v26 }
  0x5e   :  { %p796_p8 = pnand %p795_p7, %p789_p4 }
  0x60   :  { %201 = vmatpush1.bf16.msra.mxu0 %v663_v17  ;;  %592 = vmatpush3.bf16.msra.mxu1 %v679_v27 }
  0x61   :  { %202 = vmatprep.subr.bf16.mxu0 %v664_v18  ;;  %593 = vmatprep.subr.bf16.mxu1 %v680_v28 }
  0x64   :  { %203 = vmatpush1.bf16.msra.mxu0 %v666_v22  ;;  %594 = vmatpush3.bf16.msra.mxu1 %v681_v29 }
  0x65   :  { %204 = vmatprep.subr.bf16.mxu0 %v667_v23  ;;  %595 = vmatprep.subr.bf16.mxu1 %v682_v30 }
  0x68   :  { %205 = vmatpush1.bf16.msra.mxu0 %v669_v24  ;;  %596 = vmatpush3.bf16.msra.mxu1 %v683_v31 }
  0x69   :  { %597 = vmatprep.subr.bf16.mxu1 %v684_v32  ;;  %614 = vmatprep.subr.bf16.mxu0 %v827_v35 }
  0x6b   :  { %223 = vmatmul.mubr.bf16.vlgmr.msra.gmra.mrb[0].mxu0 %v81_v25 }
  0x6c   :  { %598 = vmatpush3.bf16.msra.mxu1 %v685_v33  ;;  %615 = vmatpush3.bf16.msra.mxu0 %v686_v34 }
  0x6d   :  { %616 = vmatprep.subr.bf16.mxu0 %v827_v35  ;;  %630 = vmatprep.mubr.msk.bf16.mxu0 %vm828_vm0, %v827_v35 }
  0x70   :  { %617 = vmatpush3.bf16.msra.mxu0 %v687_v36 }
  0x71   :  { %618 = vmatprep.subr.bf16.mxu0 %v827_v35 }
  0x74   :  { %619 = vmatpush3.bf16.msra.mxu0 %v688_v37 }
  0x75   :  { %620 = vmatprep.subr.bf16.mxu0 %v827_v35 }
  0x78   :  { %621 = vmatpush3.bf16.msra.mxu0 %v689_v55 }
  0x79   :  { %622 = vmatprep.subr.bf16.mxu0 %v827_v35 }
  0x7c   :  { %623 = vmatpush3.bf16.msra.mxu0 %v690_v56 }
  0x7d   :  { %624 = vmatprep.subr.bf16.mxu0 %v827_v35 }
  0x80   :  { %625 = vmatpush3.bf16.msra.mxu0 %v691_v57 }
  0x81   :  { %626 = vmatprep.subr.bf16.mxu0 %v827_v35 }
  0x84   :  { %627 = vmatpush3.bf16.msra.mxu0 %v692_v58 }
  0x85   :  { %628 = vmatprep.subr.bf16.mxu0 %v827_v35 }
  0x88   :  { %629 = vmatpush3.bf16.msra.mxu0 %v693_v59 }
 0x13e   :  { %v224_v45 = vpop.f32.mrb[0].mxu0 }
 0x13f   :  { %v225_v46 = vadd.f32 %v224_v45, %v103_v43  ;;  %v226_v47 = vpop.f32.mrb[1].mxu0 }
 0x140   :  { %v227_v48 = vadd.f32 %v226_v47, %v107_v44  ;;  %v228_v49 = vpop.f32.mrb[2].mxu0 }
 0x141   :  { %694 = vtanh.f32 %v225_v46  ;;  %v229_v50 = vpop.f32.mrb[3].mxu0 }
 0x142   :  { %696 = vtanh.f32 %v227_v48 }
 0x14b   :  { %v695_v51 = vpop.eup %694 }
 0x14c   :  { %v697_v52 = vpop.eup %696  ;;  %v233_v54 = vpack.c.bf16 %v695_v51, %v695_v51 }
 0x14d   :  { %v234_v53 = vpack.c.bf16 %v697_v52, %v697_v52 }
 0x14f   :  { %402 = vmatprep.mubr.bf16.mxu1 %v234_v53 }
 0x150   :  { %403 = vmatmul.mubr.bf16.vlgmr.msra.gmra.mrb[0].mxu1 %v233_v54 }
 0x223   :  { %v599_v60 = vpop.f32.mrb[0].mxu1 }
 0x224   :  { %v600_v62 = vpop.f32.mrb[1].mxu1 }
 0x225   :  { %v601_v63 = vadd.f32 %v600_v62, %v599_v60  ;;  %v602_v0 = vpop.f32.mrb[2].mxu1 }
 0x226   :  { %v603_v1 = vpop.f32.mrb[3].mxu1 }
 0x227   :  { %v405_v2 = vadd.f32 %v601_v63, %v557_v61 }
 0x229   :  { %698 = vtanh.f32 %v405_v2 }
 0x233   :  { %v699_v3 = vpop.eup %698 }
 0x234   :  { %v411_v4 = vpack.c.bf16 %v699_v3, %v699_v3 }
 0x236   :  { %631 = vmatmul.mubr.bf16.vlgmr.msra.gmra.mrb[4].mxu0 %v411_v4 }
 0x309   :  { %v517_v6 = vpop.f32.mrb[4].mxu0 }
 0x30a   :  { %v518_v7 = vadd.f32 %v574_v5, %v517_v6  ;;  %v632_v8 = vpop.f32.mrb[5].mxu0 }
 0x30b   :  { %v520_v9 = vpop.f32.mrb[6].mxu0 }
 0x30c   :  { %523 = vst [vmem:[#allocation10] sm:$0xff] %v518_v7  ;;  %v633_v10 = vpop.f32.mrb[7].mxu0 }
 0x30d   :  { %799 = shalt.err (!%p796_p8)
}
 0x30e   :  { %s800_s6 = scalar_lea.hbm %s946_s7, 128 }
 0x30f   :  { %p801_p9 = scmp.ne.s32.totalorder %s946_s7, %s800_s6  ;;  %p804_p10 = scmp.lt.u32.totalorder %s800_s6, %s946_s7 }
 0x311   :  { %p806_p11 = pnand %p804_p10, %p801_p9 }
 0x313   :  { %809 = shalt.err (!%p806_p11)
}
 0x314   :  { %533 = dma.vmem_to_hbm [thread:$0]  %s531_s8, 128, %s946_s7, [#allocation4]  }
 0x315   :  { %816 = dma.done.wait [#allocation4], 128  }
 0x316   :  { %817 = vsyncadd [#allocation4], 4294967168 }
 0x317   :  { %537 = vsyncpa [#allocation3], 1 }
 0x318   :  { %538 = vsyncpa [#allocation6], 1 }
 0x319   :  { %539 = vsyncpa [#allocation9], 1 }
 0x31a   :  { %540 = vsyncpa [#allocation4], 1 }

</bundles_post_ra>
